<compile_context>
chip_gen: v7x
topology: tpu7x:2x2x1
jax: 0.10.0
libtpu: 0.0.40
codegen_flags: <defaults>
</compile_context>

<pallas_src>
import functools

import numpy as np
import jax
import jax.numpy as jnp
from jax import lax
from jax.experimental import pallas as pl
from jax.experimental.pallas import tpu as pltpu


def _round_up(x, m):
    return ((x + m - 1) // m) * m


def _select_tile(B):
    """Pick (tb, B_pad): pairwise work runs over T = B_pad // tb row blocks."""
    if B < 128:
        # Tiny batch: one block pair; round to 16 so bf16 sublane tiling is clean.
        tb = _round_up(B, 16)
        return tb, tb
    if B <= 1024:
        # Two row blocks -> P = 3 pairs: both v7x TensorCores busy and only
        # ~0.75*B^2 pairwise exps instead of B^2 for a single block.
        tb = _round_up((B + 1) // 2, 16)
        return tb, 2 * tb
    # Large batches: largest exact divisor in [256, 512] (multiple of 16),
    # otherwise pad up to a multiple of 256.  Never go below tb=256.
    for d in range(512, 255, -16):
        if B % d == 0:
            return d, B
    return 256, _round_up(B, 256)


def _vmem_capacity_bytes():
    try:
        cap = getattr(pltpu.get_tpu_info(), "vmem_capacity_bytes", None)
        if cap:
            return int(cap)
    except Exception:
        pass
    return 64 << 20  # conservative default (v7x: 64 MiB per TensorCore)


def _directau_pair_kernel(bi_ref, bj_ref, u_r_ref, u_c_ref, i_r_ref, i_c_ref,
                          out_ref, *, tb, n_valid):
    """Partial sums of exp(-2*||x_a - x_b||^2) for one (row, col) block pair."""
    p = pl.program_id(0)
    bi = bi_ref[p]
    bj = bj_ref[p]
    diag_f = (bi == bj).astype(jnp.float32)

    # Valid (non-padded) rows in this row / col block (padding is trailing only).
    valid_r = jnp.clip(n_valid - bi * tb, 0, tb).astype(jnp.float32)
    valid_c = jnp.clip(n_valid - bj * tb, 0, tb).astype(jnp.float32)

    # A padded row is an exact zero vector: every gram entry it touches is 0 and
    # contributes exactly exp(-4); strip those analytically (no [tb,tb] mask).
    e_pad = jnp.exp(jnp.float32(-4.0))

    def pair_exp_sum(xr, xc):
        # ||x_a - x_b||^2 = 2 - 2*g_ab on unit rows  =>  exp(-2*d2) = exp(4g - 4)
        g = lax.dot_general(xr, xc,
                            dimension_numbers=(((1,), (1,)), ((), ())),
                            preferred_element_type=jnp.float32)      # [tb, tb] f32
        # TODO(synk): on v6e/v7x evaluate this exp in bf16 (f32 accumulate) --
        # the kernel is EUP-bound at large B; keep f32 on v5e (no bf16 EUP).
        full = jnp.sum(jnp.exp(4.0 * g - 4.0))
        full = full - e_pad * (tb * tb - valid_r * valid_c)
        # Diagonal block pair: strict-upper-triangle sum = (full - trace)/2.
        # Rebuild the trace from per-row squared norms (matches the MXU gram
        # diagonal up to accumulation order; no [tb,tb] iota mask needed).
        xr32 = xr.astype(jnp.float32)
        sq = jnp.sum(xr32 * xr32, axis=-1, keepdims=True)            # [tb, 1]
        trace = jnp.sum(jnp.exp(4.0 * sq - 4.0))
        trace = trace - e_pad * (tb - valid_r)
        return full - diag_f * 0.5 * (full + trace)

    u_pair = pair_exp_sum(u_r_ref[...], u_c_ref[...])
    i_pair = pair_exp_sum(i_r_ref[...], i_c_ref[...])

    # Pack the two partial sums into sublane rows 0/1 of a lane-dense tile.
    row = lax.broadcasted_iota(jnp.int32, (8, 128), 0)
    out_ref[0] = jnp.where(row == 0, u_pair, jnp.where(row == 1, i_pair, 0.0))


def directau_forward(user_table, item_table, user, positive, negative,
                     gamma=1.0, reg_lambda=1e-4, gram_dtype=jnp.bfloat16):
    """MF-encoder DirectAU forward. Returns [align_loss, uniform_loss, reg_loss]."""
    del negative  # unused by the reference forward pass

    # Embedding lookups stay as an XLA gather (noise at these sizes).
    # TODO(synk): for very large batches, fold the gather into the kernel via a
    # manual DMA gather on the HBM tables instead of materializing [B, D].
    u_emb = user_table[user].astype(jnp.float32)       # [B, D]
    i_emb = item_table[positive].astype(jnp.float32)   # [B, D]
    B, D = u_emb.shape
    assert B >= 2, "uniformity loss needs at least two rows"

    eps = 1e-12

    def normalize(x):
        n = jnp.sqrt(jnp.sum(x * x, axis=-1, keepdims=True))
        return x / jnp.maximum(n, eps)

    un = normalize(u_emb)
    inn = normalize(i_emb)

    # O(B*D) terms are plain XLA in the wrapper (free vs the O(B^2) kernel).
    align_loss = jnp.sum((un - inn) ** 2) / B
    reg_loss = reg_lambda * 0.5 * (jnp.sum(u_emb * u_emb) + jnp.sum(i_emb * i_emb)) / B

    # --- O(B^2) pairwise term: Pallas kernel over upper-triangular block pairs.
    tb, B_pad = _select_tile(B)
    T = B_pad // tb
    P = T * (T + 1) // 2

    # Normalized rows in the MXU feed dtype (bf16 by default).
    un_k = un.astype(gram_dtype)
    in_k = inn.astype(gram_dtype)
    if B_pad != B:
        pad = ((0, B_pad - B), (0, 0))
        un_k = jnp.pad(un_k, pad)   # exact zero rows, removed analytically in-kernel
        in_k = jnp.pad(in_k, pad)

    # Upper-triangular block-pair coordinates (scalar-prefetched into SMEM).
    bi = np.empty((P,), np.int32)
    bj = np.empty((P,), np.int32)
    k = 0
    for a in range(T):
        for b in range(a, T):
            bi[k] = a
            bj[k] = b
            k += 1
    bi = jnp.asarray(bi)
    bj = jnp.asarray(bj)

    # VMEM budget: 4 double-buffered [tb, D] inputs + ~3 f32 [tb, tb] temps.
    in_bytes = jnp.dtype(gram_dtype).itemsize
    est = 4 * 2 * tb * D * in_bytes + 3 * tb * tb * 4 + 2 * 8 * 128 * 4 + (4 << 20)
    cap = min(48 << 20, max(16 << 20, _vmem_capacity_bytes() // 2))  # ~32 MiB on v7x
    vmem_limit = int(min(max(est, 16 << 20), cap))

    row_spec = pl.BlockSpec((tb, D), lambda p, bi_r, bj_r: (bi_r[p], 0))
    col_spec = pl.BlockSpec((tb, D), lambda p, bi_r, bj_r: (bj_r[p], 0))
    # TODO(synk): on v5e add pipeline_mode=pl.Buffered(3) to the col specs to
    # hide the slower HBM stream; on v7x drop row-spec buffering to 1 if VMEM
    # gets tight (Pallas already skips the copy when the block index repeats).

    partials = pl.pallas_call(
        functools.partial(_directau_pair_kernel, tb=tb, n_valid=B),
        out_shape=jax.ShapeDtypeStruct((P, 8, 128), jnp.float32),
        grid_spec=pltpu.PrefetchScalarGridSpec(
            num_scalar_prefetch=2,
            grid=(P,),
            in_specs=[row_spec, col_spec, row_spec, col_spec],
            out_specs=pl.BlockSpec((1, 8, 128), lambda p, bi_r, bj_r: (p, 0, 0)),
        ),
        compiler_params=pltpu.CompilerParams(
            dimension_semantics=("parallel",),
            vmem_limit_bytes=vmem_limit),
    )(bi, bj, un_k, un_k, in_k, in_k)

    u_pair_sum = jnp.sum(partials[:, 0, 0])
    i_pair_sum = jnp.sum(partials[:, 1, 0])

    n_pairs = B * (B - 1) / 2.0
    uniform_loss = gamma * 0.5 * (jnp.log(u_pair_sum / n_pairs)
                                  + jnp.log(i_pair_sum / n_pairs))
    return [align_loss, uniform_loss, reg_loss]


def _directau_reference(user_table, item_table, user, positive, gamma, reg_lambda):
    """Pure-JAX reference for validation."""
    u = user_table[user].astype(jnp.float32)
    it = item_table[positive].astype(jnp.float32)
    B = u.shape[0]
    eps = 1e-12
    un = u / jnp.maximum(jnp.linalg.norm(u, axis=-1, keepdims=True), eps)
    inn = it / jnp.maximum(jnp.linalg.norm(it, axis=-1, keepdims=True), eps)
    align = jnp.sum((un - inn) ** 2) / B

    def uniformity(x):
        g = x @ x.T
        d2 = 2.0 - 2.0 * g
        r = jax.lax.broadcasted_iota(jnp.int32, (B, B), 0)
        c = jax.lax.broadcasted_iota(jnp.int32, (B, B), 1)
        mask = (r < c).astype(jnp.float32)
        return jnp.log(jnp.sum(jnp.exp(-2.0 * d2) * mask) / (B * (B - 1) / 2.0))

    uniform = gamma * (uniformity(un) + uniformity(inn)) * 0.5
    reg = reg_lambda * 0.5 * (jnp.sum(u * u) + jnp.sum(it * it)) / B
    return [align, uniform, reg]


def xavier_uniform(key, shape, dtype=jnp.float32):
    fan_in, fan_out = shape
    bound = (6.0 / (fan_in + fan_out)) ** 0.5
    return jax.random.uniform(key, shape, dtype=dtype, minval=-bound, maxval=bound)


if __name__ == "__main__":
    key = jax.random.PRNGKey(0)
    k_u, k_i, k_idx_u, k_idx_p, k_idx_n = jax.random.split(key, 5)

    num_users, num_items, emb_dim = 50, 80, 32
    batch = 8
    gamma, reg_lambda = 1.0, 1e-4

    # Deterministic parameter init (matches nn.init.xavier_uniform_ shapes).
    user_table = xavier_uniform(k_u, (num_users, emb_dim))
    item_table = xavier_uniform(k_i, (num_items, emb_dim))

    user = jax.random.randint(k_idx_u, (batch,), 0, num_users, dtype=jnp.int32)
    positive = jax.random.randint(k_idx_p, (batch,), 0, num_items, dtype=jnp.int32)
    negative = jax.random.randint(k_idx_n, (batch,), 0, num_items, dtype=jnp.int32)

    ref = _directau_reference(user_table, item_table, user, positive,
                              gamma, reg_lambda)

    # Exact-path check (f32 gram operands): tight match to the pure-JAX reference.
    loss_f32 = directau_forward(user_table, item_table, user, positive, negative,
                                gamma=gamma, reg_lambda=reg_lambda,
                                gram_dtype=jnp.float32)
    loss_f32 = [jax.block_until_ready(l) for l in loss_f32]
    assert all(jnp.isfinite(l) for l in loss_f32)
    for got, want in zip(loss_f32, ref):
        np.testing.assert_allclose(np.asarray(got), np.asarray(want),
                                   rtol=1e-3, atol=1e-5)

    # Default fast path (bf16 MXU operands, f32 accumulation / f32 exp):
    # exp(4g-4) amplifies the bf16 gram error ~4x, so use a looser tolerance.
    loss_list = directau_forward(user_table, item_table, user, positive, negative,
                                 gamma=gamma, reg_lambda=reg_lambda)
    loss_list = [jax.block_until_ready(l) for l in loss_list]
    assert all(jnp.isfinite(l) for l in loss_list)
    for got, want in zip(loss_list, ref):
        np.testing.assert_allclose(np.asarray(got), np.asarray(want),
                                   rtol=5e-2, atol=5e-3)

    print("KERNEL_OK")
</pallas_src>

<mosaic_0001>
module attributes {stable_mosaic.version = 11 : i64} {
  func.func @_directau_pair_kernel(%arg0: i32, %arg1: memref<1xi32, #tpu.memory_space<smem>>, %arg2: memref<1xi32, #tpu.memory_space<smem>>, %arg3: memref<16x32xf32, #tpu.memory_space<vmem>>, %arg4: memref<16x32xf32, #tpu.memory_space<vmem>>, %arg5: memref<16x32xf32, #tpu.memory_space<vmem>>, %arg6: memref<16x32xf32, #tpu.memory_space<vmem>>, %arg7: memref<1x8x128xf32, #tpu.memory_space<vmem>>) attributes {dimension_semantics = [#tpu.dimension_semantics<parallel>], iteration_bounds = array<i64: 1>, scalar_prefetch = 2 : i64, scratch_operands = 0 : i64, tpu.core_type = #tpu.core_type<tc>, window_params = [{transform_indices = @transform_0, window_bounds = array<i64: 16, 32>}, {transform_indices = @transform_1, window_bounds = array<i64: 16, 32>}, {transform_indices = @transform_2, window_bounds = array<i64: 16, 32>}, {transform_indices = @transform_3, window_bounds = array<i64: 16, 32>}, {transform_indices = @transform_4, window_bounds = array<i64: 1, 8, 128>}]} {
    %0 = arith.index_cast %arg0 : i32 to index
    %1 = memref.load %arg1[%0] : memref<1xi32, #tpu.memory_space<smem>>
    %2 = arith.index_cast %arg0 : i32 to index
    %3 = memref.load %arg2[%2] : memref<1xi32, #tpu.memory_space<smem>>
    %4 = arith.cmpi eq, %1, %3 : i32
    %5 = arith.extui %4 : i1 to i32
    %6 = arith.sitofp %5 : i32 to f32
    %c16_i32 = arith.constant 16 : i32
    %7 = arith.muli %1, %c16_i32 : i32
    %c8_i32 = arith.constant 8 : i32
    %8 = arith.subi %c8_i32, %7 : i32
    %c0_i32 = arith.constant 0 : i32
    %c16_i32_0 = arith.constant 16 : i32
    %9 = arith.maxsi %c0_i32, %8 : i32
    %10 = arith.minsi %c16_i32_0, %9 : i32
    %11 = arith.sitofp %10 : i32 to f32
    %c16_i32_1 = arith.constant 16 : i32
    %12 = arith.muli %3, %c16_i32_1 : i32
    %c8_i32_2 = arith.constant 8 : i32
    %13 = arith.subi %c8_i32_2, %12 : i32
    %c0_i32_3 = arith.constant 0 : i32
    %c16_i32_4 = arith.constant 16 : i32
    %14 = arith.maxsi %c0_i32_3, %13 : i32
    %15 = arith.minsi %c16_i32_4, %14 : i32
    %16 = arith.sitofp %15 : i32 to f32
    %cst = arith.constant -4.000000e+00 : f32
    %17 = math.exp %cst : f32
    %c0 = arith.constant 0 : index
    %c0_5 = arith.constant 0 : index
    %18 = vector.load %arg3[%c0, %c0_5] : memref<16x32xf32, #tpu.memory_space<vmem>>, vector<16x32xf32>
    %c0_6 = arith.constant 0 : index
    %c0_7 = arith.constant 0 : index
    %19 = vector.load %arg4[%c0_6, %c0_7] : memref<16x32xf32, #tpu.memory_space<vmem>>, vector<16x32xf32>
    %cst_8 = arith.constant dense<0.000000e+00> : vector<16x16xf32>
    %20 = tpu.matmul %18, %19, %cst_8 {dimension_numbers = #tpu.dot_dimension_numbers<[1], [1], [0], [0], [0, 0, 1, 0], [], []>} : vector<16x32xf32>, vector<16x32xf32>, vector<16x16xf32> -> vector<16x16xf32>
    %cst_9 = arith.constant 4.000000e+00 : f32
    %21 = vector.broadcast %cst_9 : f32 to vector<16x16xf32>
    %22 = arith.mulf %21, %20 : vector<16x16xf32>
    %cst_10 = arith.constant 4.000000e+00 : f32
    %23 = vector.broadcast %cst_10 : f32 to vector<16x16xf32>
    %24 = arith.subf %22, %23 : vector<16x16xf32>
    %25 = math.exp %24 : vector<16x16xf32>
    %26 = vector.shape_cast %25 : vector<16x16xf32> to vector<1x16x16xf32>
    %cst_11 = arith.constant dense<0.000000e+00> : vector<1xf32>
    %27 = vector.multi_reduction <add>, %26, %cst_11 [1, 2] : vector<1x16x16xf32> to vector<1xf32>
    %28 = vector.shape_cast %27 : vector<1xf32> to vector<1x1x1xf32>
    %29 = vector.extract %28[0, 0, 0] : f32 from vector<1x1x1xf32>
    %30 = arith.mulf %11, %16 : f32
    %cst_12 = arith.constant 2.560000e+02 : f32
    %31 = arith.subf %cst_12, %30 : f32
    %32 = arith.mulf %17, %31 : f32
    %33 = arith.subf %29, %32 : f32
    %34 = arith.mulf %18, %18 : vector<16x32xf32>
    %cst_13 = arith.constant dense<0.000000e+00> : vector<16xf32>
    %35 = vector.multi_reduction <add>, %34, %cst_13 [1] : vector<16x32xf32> to vector<16xf32>
    %36 = vector.shape_cast %35 : vector<16xf32> to vector<16x1xf32>
    %cst_14 = arith.constant 4.000000e+00 : f32
    %37 = vector.broadcast %cst_14 : f32 to vector<16x1xf32>
    %38 = arith.mulf %37, %36 : vector<16x1xf32>
    %cst_15 = arith.constant 4.000000e+00 : f32
    %39 = vector.broadcast %cst_15 : f32 to vector<16x1xf32>
    %40 = arith.subf %38, %39 : vector<16x1xf32>
    %41 = math.exp %40 : vector<16x1xf32>
    %42 = vector.shape_cast %41 : vector<16x1xf32> to vector<1x16x1xf32>
    %cst_16 = arith.constant dense<0.000000e+00> : vector<1xf32>
    %43 = vector.multi_reduction <add>, %42, %cst_16 [1, 2] : vector<1x16x1xf32> to vector<1xf32>
    %44 = vector.shape_cast %43 : vector<1xf32> to vector<1x1x1xf32>
    %45 = vector.extract %44[0, 0, 0] : f32 from vector<1x1x1xf32>
    %cst_17 = arith.constant 1.600000e+01 : f32
    %46 = arith.subf %cst_17, %11 : f32
    %47 = arith.mulf %17, %46 : f32
    %48 = arith.subf %45, %47 : f32
    %cst_18 = arith.constant 5.000000e-01 : f32
    %49 = arith.mulf %6, %cst_18 : f32
    %50 = arith.addf %33, %48 : f32
    %51 = arith.mulf %49, %50 : f32
    %52 = arith.subf %33, %51 : f32
    %c0_19 = arith.constant 0 : index
    %c0_20 = arith.constant 0 : index
    %53 = vector.load %arg5[%c0_19, %c0_20] : memref<16x32xf32, #tpu.memory_space<vmem>>, vector<16x32xf32>
    %c0_21 = arith.constant 0 : index
    %c0_22 = arith.constant 0 : index
    %54 = vector.load %arg6[%c0_21, %c0_22] : memref<16x32xf32, #tpu.memory_space<vmem>>, vector<16x32xf32>
    %cst_23 = arith.constant dense<0.000000e+00> : vector<16x16xf32>
    %55 = tpu.matmul %53, %54, %cst_23 {dimension_numbers = #tpu.dot_dimension_numbers<[1], [1], [0], [0], [0, 0, 1, 0], [], []>} : vector<16x32xf32>, vector<16x32xf32>, vector<16x16xf32> -> vector<16x16xf32>
    %cst_24 = arith.constant 4.000000e+00 : f32
    %56 = vector.broadcast %cst_24 : f32 to vector<16x16xf32>
    %57 = arith.mulf %56, %55 : vector<16x16xf32>
    %cst_25 = arith.constant 4.000000e+00 : f32
    %58 = vector.broadcast %cst_25 : f32 to vector<16x16xf32>
    %59 = arith.subf %57, %58 : vector<16x16xf32>
    %60 = math.exp %59 : vector<16x16xf32>
    %61 = vector.shape_cast %60 : vector<16x16xf32> to vector<1x16x16xf32>
    %cst_26 = arith.constant dense<0.000000e+00> : vector<1xf32>
    %62 = vector.multi_reduction <add>, %61, %cst_26 [1, 2] : vector<1x16x16xf32> to vector<1xf32>
    %63 = vector.shape_cast %62 : vector<1xf32> to vector<1x1x1xf32>
    %64 = vector.extract %63[0, 0, 0] : f32 from vector<1x1x1xf32>
    %65 = arith.mulf %11, %16 : f32
    %cst_27 = arith.constant 2.560000e+02 : f32
    %66 = arith.subf %cst_27, %65 : f32
    %67 = arith.mulf %17, %66 : f32
    %68 = arith.subf %64, %67 : f32
    %69 = arith.mulf %53, %53 : vector<16x32xf32>
    %cst_28 = arith.constant dense<0.000000e+00> : vector<16xf32>
    %70 = vector.multi_reduction <add>, %69, %cst_28 [1] : vector<16x32xf32> to vector<16xf32>
    %71 = vector.shape_cast %70 : vector<16xf32> to vector<16x1xf32>
    %cst_29 = arith.constant 4.000000e+00 : f32
    %72 = vector.broadcast %cst_29 : f32 to vector<16x1xf32>
    %73 = arith.mulf %72, %71 : vector<16x1xf32>
    %cst_30 = arith.constant 4.000000e+00 : f32
    %74 = vector.broadcast %cst_30 : f32 to vector<16x1xf32>
    %75 = arith.subf %73, %74 : vector<16x1xf32>
    %76 = math.exp %75 : vector<16x1xf32>
    %77 = vector.shape_cast %76 : vector<16x1xf32> to vector<1x16x1xf32>
    %cst_31 = arith.constant dense<0.000000e+00> : vector<1xf32>
    %78 = vector.multi_reduction <add>, %77, %cst_31 [1, 2] : vector<1x16x1xf32> to vector<1xf32>
    %79 = vector.shape_cast %78 : vector<1xf32> to vector<1x1x1xf32>
    %80 = vector.extract %79[0, 0, 0] : f32 from vector<1x1x1xf32>
    %cst_32 = arith.constant 1.600000e+01 : f32
    %81 = arith.subf %cst_32, %11 : f32
    %82 = arith.mulf %17, %81 : f32
    %83 = arith.subf %80, %82 : f32
    %cst_33 = arith.constant 5.000000e-01 : f32
    %84 = arith.mulf %6, %cst_33 : f32
    %85 = arith.addf %68, %83 : f32
    %86 = arith.mulf %84, %85 : f32
    %87 = arith.subf %68, %86 : f32
    %88 = tpu.iota {dimensions = array<i32: 0>} : vector<8x128xi32>
    %c0_i32_34 = arith.constant 0 : i32
    %89 = vector.broadcast %c0_i32_34 : i32 to vector<8x128xi32>
    %90 = arith.cmpi eq, %88, %89 : vector<8x128xi32>
    %c1_i32 = arith.constant 1 : i32
    %91 = vector.broadcast %c1_i32 : i32 to vector<8x128xi32>
    %92 = arith.cmpi eq, %88, %91 : vector<8x128xi32>
    %cst_35 = arith.constant 0.000000e+00 : f32
    %93 = vector.broadcast %87 : f32 to vector<8x128xf32>
    %94 = vector.broadcast %cst_35 : f32 to vector<8x128xf32>
    %95 = arith.select %92, %93, %94 : vector<8x128xi1>, vector<8x128xf32>
    %96 = vector.broadcast %52 : f32 to vector<8x128xf32>
    %97 = arith.select %90, %96, %95 : vector<8x128xi1>, vector<8x128xf32>
    %c0_36 = arith.constant 0 : index
    %c0_37 = arith.constant 0 : index
    %c0_38 = arith.constant 0 : index
    %98 = vector.load %arg7[%c0_36, %c0_37, %c0_38] : memref<1x8x128xf32, #tpu.memory_space<vmem>>, vector<1x8x128xf32>
    %99 = vector.shape_cast %98 : vector<1x8x128xf32> to vector<8x128xf32>
    %100 = vector.shape_cast %97 : vector<8x128xf32> to vector<1x8x128xf32>
    tpu.vector_store %arg7[%c0_36, %c0_37, %c0_38], %100 {strides = array<i32>} : memref<1x8x128xf32, #tpu.memory_space<vmem>>, vector<1x8x128xf32>,
    return
  }
  func.func @transform_0(%arg0: i32, %arg1: memref<1xi32, #tpu.memory_space<smem>>, %arg2: memref<1xi32, #tpu.memory_space<smem>>) -> (i32, i32) {
    %0 = arith.index_cast %arg0 : i32 to index
    %1 = memref.load %arg1[%0] : memref<1xi32, #tpu.memory_space<smem>>
    %c0_i32 = arith.constant 0 : i32
    %c0_i32_0 = arith.constant 0 : i32
    return %1, %c0_i32 : i32, i32
  }
  func.func @transform_1(%arg0: i32, %arg1: memref<1xi32, #tpu.memory_space<smem>>, %arg2: memref<1xi32, #tpu.memory_space<smem>>) -> (i32, i32) {
    %0 = arith.index_cast %arg0 : i32 to index
    %1 = memref.load %arg2[%0] : memref<1xi32, #tpu.memory_space<smem>>
    %c0_i32 = arith.constant 0 : i32
    %c0_i32_0 = arith.constant 0 : i32
    return %1, %c0_i32 : i32, i32
  }
  func.func @transform_2(%arg0: i32, %arg1: memref<1xi32, #tpu.memory_space<smem>>, %arg2: memref<1xi32, #tpu.memory_space<smem>>) -> (i32, i32) {
    %0 = arith.index_cast %arg0 : i32 to index
    %1 = memref.load %arg1[%0] : memref<1xi32, #tpu.memory_space<smem>>
    %c0_i32 = arith.constant 0 : i32
    %c0_i32_0 = arith.constant 0 : i32
    return %1, %c0_i32 : i32, i32
  }
  func.func @transform_3(%arg0: i32, %arg1: memref<1xi32, #tpu.memory_space<smem>>, %arg2: memref<1xi32, #tpu.memory_space<smem>>) -> (i32, i32) {
    %0 = arith.index_cast %arg0 : i32 to index
    %1 = memref.load %arg2[%0] : memref<1xi32, #tpu.memory_space<smem>>
    %c0_i32 = arith.constant 0 : i32
    %c0_i32_0 = arith.constant 0 : i32
    return %1, %c0_i32 : i32, i32
  }
  func.func @transform_4(%arg0: i32, %arg1: memref<1xi32, #tpu.memory_space<smem>>, %arg2: memref<1xi32, #tpu.memory_space<smem>>) -> (i32, i32, i32) {
    %c0_i32 = arith.constant 0 : i32
    %c0_i32_0 = arith.constant 0 : i32
    %c0_i32_1 = arith.constant 0 : i32
    return %arg0, %c0_i32, %c0_i32_0 : i32, i32, i32
  }
}

</mosaic_0001>

<bundles_post_ra>
// kernel: tpu_custom_call.1
= control target key start
LH: loop header
LB: loop body
LE: loop exit
PB: predicated region body
PF: predicated region fallthrough
CT: control target
= control target key end

     0   :  { %13 = vsyncpa [#allocation6], 0  ;;  %s805_s0 = inlined_call_operand.<no memory space> [shape: s32[1], index: 0, kind: input, shape index: {}]   ;;  %s806_s1 = inlined_call_operand.<no memory space> [shape: s32[1], index: 1, kind: input, shape index: {}]   ;;  %s807_s2 = inlined_call_operand.hbm [shape: f32[16,32], index: 2, kind: input, shape index: {}]   ;;  %s808_s3 = inlined_call_operand.hbm [shape: f32[16,32], index: 3, kind: input, shape index: {}]   ;;  %s809_s4 = inlined_call_operand.hbm [shape: f32[16,32], index: 4, kind: input, shape index: {}]   ;;  %s810_s5 = inlined_call_operand.vmem [shape: f32[16,32], index: 5, kind: input, shape index: {}]   ;;  %s811_s6 = inlined_call_operand.hbm [shape: f32[1,8,128], index: 6, kind: output, shape index: {}]  }
   0x1   :  { %14 = vsyncpa [#allocation9], 0 }
   0x2   :  { %15 = vsyncpa [#allocation7], 0  ;;  %s493_s23 = sshll.u32 %s806_s1, 8  ;;  %s663_s27 = smov [#allocation8]  }
   0x3   :  { %s40_s26 = scalar_lea.hbm %s808_s3, %s493_s23  ;;  %s41_s28 = sshll.u32 %s663_s27, 4  ;;  %s42_s28 = int_to_ptr.vmem [resolvable:$true] %s41_s28 }
   0x4   :  { %s492_s7 = sshll.u32 %s805_s0, 8  ;;  %s563_s8 = scalar_lea.hbm %s40_s26, 256 }
   0x5   :  { %p564_p0 = scmp.ne.s32.totalorder %s40_s26, %s563_s8  ;;  %s565_s11 = scalar_lea.hbm %s808_s3, 256 }
   0x6   :  { %p566_p1 = scmp.lt.u32.totalorder %s40_s26, %s808_s3  ;;  %p567_p2 = scmp.lt.u32.totalorder %s565_s11, %s563_s8 }
   0x7   :  { %p569_p4 = scmp.lt.u32.totalorder %s563_s8, %s40_s26 }
   0x8   :  { %p568_p3 = por %p567_p2, %p566_p1 }
   0xa   :  { %p570_p5 = por %p569_p4, %p568_p3 }
   0xc   :  { %p571_p6 = pnand %p570_p5, %p564_p0 }
   0xe   :  { %574 = shalt.err (!%p571_p6)
}
   0xf   :  { %s575_s14 = scalar_lea.vmem %s42_s28, 256  ;;  %p580_p8 = scmp.lt.s32.totalorder %s42_s28, %s42_s28 }
  0x10   :  { %p576_p7 = scmp.ne.s32.totalorder %s42_s28, %s575_s14  ;;  %p581_p9 = scmp.lt.s32.totalorder %s575_s14, %s575_s14 }
  0x12   :  { %p582_p10 = por %p581_p9, %p580_p8 }
  0x14   :  { %p583_p11 = pnand %p582_p10, %p576_p7 }
  0x16   :  { %586 = shalt.err (!%p583_p11)
}
  0x17   :  { %s664_s15 = smov 128   ;;  %s665_s16 = smov 8  }
  0x18   :  { %47 = dma.hbm_to_vmem [thread:$0]  %s40_s26, 256, %s42_s28, [#allocation9], %s664_s15, %s664_s15, %s665_s16  }
  0x19   :  { %s24_s18 = scalar_lea.hbm %s807_s2, %s492_s7  ;;  %s666_s19 = smov [#allocation5]  }
  0x1a   :  { %s25_s20 = sshll.u32 %s666_s19, 4  ;;  %s728_s23 = scalar_lea.hbm %s809_s4, %s492_s7  ;;  %s26_s20 = int_to_ptr.vmem [resolvable:$true] %s25_s20 }
  0x1b   :  { %s587_s24 = scalar_lea.hbm %s24_s18, 256  ;;  %s589_s29 = scalar_lea.hbm %s807_s2, 256 }
  0x1c   :  { %p588_p12 = scmp.ne.s32.totalorder %s24_s18, %s587_s24  ;;  %p590_p13 = scmp.lt.u32.totalorder %s24_s18, %s807_s2 }
  0x1d   :  { %p591_p0 = scmp.lt.u32.totalorder %s589_s29, %s587_s24  ;;  %p593_p2 = scmp.lt.u32.totalorder %s587_s24, %s24_s18 }
  0x1f   :  { %p592_p1 = por %p591_p0, %p590_p13 }
  0x21   :  { %p594_p3 = por %p593_p2, %p592_p1 }
  0x23   :  { %p595_p4 = pnand %p594_p3, %p588_p12 }
  0x25   :  { %598 = shalt.err (!%p595_p4)
}
  0x26   :  { %s599_s28 = scalar_lea.vmem %s26_s20, 256  ;;  %p604_p6 = scmp.lt.s32.totalorder %s26_s20, %s26_s20 }
  0x27   :  { %p600_p5 = scmp.ne.s32.totalorder %s26_s20, %s599_s28  ;;  %p605_p7 = scmp.lt.s32.totalorder %s599_s28, %s599_s28 }
  0x29   :  { %p606_p8 = por %p605_p7, %p604_p6 }
  0x2b   :  { %p607_p9 = pnand %p606_p8, %p600_p5 }
  0x2d   :  { %610 = shalt.err (!%p607_p9)
}
  0x2e   :  { %31 = dma.hbm_to_vmem [thread:$0]  %s24_s18, 256, %s26_s20, [#allocation6], %s664_s15, %s664_s15, %s665_s16  }
  0x2f   :  { %s667_s2 = smov [#allocation10]   ;;  %s611_s8 = scalar_lea.hbm %s728_s23, 256 }
  0x30   :  { %s57_s7 = sshll.u32 %s667_s2, 4  ;;  %p612_p10 = scmp.ne.s32.totalorder %s728_s23, %s611_s8  ;;  %s58_s7 = int_to_ptr.vmem [resolvable:$true] %s57_s7 }
  0x31   :  { %s613_s11 = scalar_lea.hbm %s809_s4, 256  ;;  %p614_p11 = scmp.lt.u32.totalorder %s728_s23, %s809_s4 }
  0x32   :  { %p615_p12 = scmp.lt.u32.totalorder %s613_s11, %s611_s8  ;;  %p617_p0 = scmp.lt.u32.totalorder %s611_s8, %s728_s23 }
  0x34   :  { %p616_p13 = por %p615_p12, %p614_p11 }
  0x36   :  { %p618_p1 = por %p617_p0, %p616_p13 }
  0x38   :  { %p619_p2 = pnand %p618_p1, %p612_p10 }
  0x3a   :  { %622 = shalt.err (!%p619_p2)
}
  0x3b   :  { %s623_s14 = scalar_lea.vmem %s58_s7, 256  ;;  %p628_p4 = scmp.lt.s32.totalorder %s58_s7, %s58_s7 }
  0x3c   :  { %p624_p3 = scmp.ne.s32.totalorder %s58_s7, %s623_s14  ;;  %p629_p5 = scmp.lt.s32.totalorder %s623_s14, %s623_s14 }
  0x3e   :  { %p630_p6 = por %p629_p5, %p628_p4 }
  0x40   :  { %p631_p7 = pnand %p630_p6, %p624_p3 }
  0x42   :  { %634 = shalt.err (!%p631_p7)
}
  0x43   :  { %63 = dma.hbm_to_vmem [thread:$0]  %s728_s23, 256, %s58_s7, [#allocation9], %s664_s15, %s664_s15, %s665_s16  }
  0x44   :  { %657 = dma.done.wait [#allocation6], 256  }
  0x45   :  { %658 = vsyncadd [#allocation6], 4294967040 }
  0x46   :  { %659 = dma.done.wait [#allocation9], 512  }
  0x47   :  { %660 = vsyncadd [#allocation9], 4294966784  ;;  %s462_s17 = sshll.u32 %s806_s1, 1  ;;  %vm126_vm0 = vcmask 261120   ;;  %v124_v1 = vld [vmem:[#allocation8] sm:$0xff]  ;;  %v125_v2 = vld [vmem:[#allocation8 + $0x8] sm:$0xff]  ;;  %p105_p13 = scmp.eq.s32.totalorder %s805_s0, %s806_s1 }
  0x48   :  { %p97_p8 = scmp.lt.s32.totalorder %s462_s17, 1  ;;  %vm758_vm1 = vmpackc.low %vm126_vm0, %vm126_vm0  ;;  %v521_v4 = vpack.c.bf16 %v125_v2, %v124_v1  ;;  %v122_v6 = vld [vmem:[#allocation5] sm:$0xff]  ;;  %v123_v7 = vld [vmem:[#allocation5 + $0x8] sm:$0xff]  ;;  %vm255_vm2 = vcmask 7168   ;;  %vm222_vm3 = vcmask 130048   ;;  %s464_s21 = sshll.u32 %s805_s0, 4 }
  0x49   :  { %511 = vmatprep.mubr.msk.f32.mxu0 %vm126_vm0, %v122_v6  ;;  %v239_v9 = vmul.f32 %v122_v6, %v122_v6  ;;  %v275_v10 = vld [vmem:[#allocation10] sm:$0xff]  ;;  %v276_v11 = vld [vmem:[#allocation10 + $0x8] sm:$0xff]  ;;  %v240_v12 = vmul.f32 %v123_v7, %v123_v7  ;;  %s470_s24 = sshll.u32 %s806_s1, 4  ;;  %s109_s25 = ssub.s32 8, %s464_s21 }
  0x4a   :  { %s815_s17 = smov (!%p97_p8, %s462_s17), 1  ;;  %523 = vmatprep.subr.msk.bf16.mxu0 %vm758_vm1, %v521_v4  ;;  %518 = vmatprep.mubr.msk.f32.mxu1 %vm126_vm0, %v275_v10  ;;  %v387_v13 = vmul.f32 %v275_v10, %v275_v10  ;;  %v388_v14 = vmul.f32 %v276_v11, %v276_v11  ;;  %s116_s27 = ssub.s32 8, %s470_s24 }
  0x4b   :  { %s463_s18 = sshll.u32 %s815_s17, 3  ;;  %526 = vmatpush3.bf16.xpose.msk.msra.mxu0 %vm758_vm1, %v521_v4  ;;  %v241_v15 = vsel %vm126_vm0, %v239_v9, 0.0  ;;  %v244_v17 = vsel %vm126_vm0, %v240_v12, 0.0  ;;  %p110_p9 = scmp.gt.s32.totalorder %s109_s25, 0 }
  0x4c   :  { %s100_s16 = scalar_lea.vmem %s810_s5, %s463_s18  ;;  %242 = vadd.xlane.f32.xlu0 %v241_v15  ;;  %v389_v16 = vsel %vm126_vm0, %v387_v13, 0.0  ;;  %v392_v18 = vsel %vm126_vm0, %v388_v14, 0.0  ;;  %p117_p10 = scmp.gt.s32.totalorder %s116_s27, 0 }
  0x4d   :  { %v277_v3 = vld [vmem:[%s100_s16] sm:$0xff]  ;;  %v278_v5 = vld [vmem:[%s100_s16 + $0x8] sm:$0xff]  ;;  %390 = vadd.xlane.f32.xlu1 %v389_v16  ;;  %p465_p11 = scmp.lt.s32.totalorder %s109_s25, 16  ;;  %p471_p12 = scmp.lt.s32.totalorder %s116_s27, 16 }
  0x4e   :  { %v527_v8 = vpack.c.bf16 %v278_v5, %v277_v3  ;;  %s817_s25 = smov (!%p110_p9, %s109_s25), 0  ;;  %s819_s27 = smov (!%p117_p10, %s116_s27), 0 }
  0x4f   :  { %s821_s25 = smov (!%p465_p11, %s817_s25), 16  ;;  %s823_s27 = smov (!%p471_p12, %s819_s27), 16 }
  0x50   :  { %529 = vmatprep.subr.msk.bf16.mxu1 %vm758_vm1, %v527_v8  ;;  %245 = vadd.xlane.f32.xlu0 %v244_v17  ;;  %s114_s29 = scvt.s32.f32 %s821_s25  ;;  %s121_s30 = scvt.s32.f32 %s823_s27 }
  0x51   :  { %532 = vmatpush3.bf16.xpose.msk.msra.mxu1 %vm758_vm1, %v527_v8  ;;  %393 = vadd.xlane.f32.xlu1 %v392_v18  ;;  %s106_s11 = scalar_select %p105_p13, 1, 0 }
  0x52   :  { %512 = vmatmul.mubr.msk.f32.vlgmr.msra.gmra.mrb[0].mxu0 %vm126_vm0, %v123_v7  ;;  %s235_s26 = smul.f32 %s121_s30, %s114_s29  ;;  %s268_s10 = ssub.f32 16.0, %s114_s29 }
  0x53   :  { %s107_s14 = scvt.s32.f32 %s106_s11  ;;  %s668_s25 = smov [#allocation11]  }
  0x54   :  { %s236_s9 = ssub.f32 256.0, %s235_s26  ;;  %s269_s13 = smul.f32 0.01831564, %s268_s10 }
  0x55   :  { %s271_s19 = smul.f32 0.5, %s107_s14  ;;  %s434_s27 = sshll.u32 %s668_s25, 4  ;;  %s435_s27 = int_to_ptr.vmem [resolvable:$true] %s434_s27 }
  0x56   :  { %s237_s12 = smul.f32 0.01831564, %s236_s9  ;;  %s635_s29 = scalar_lea.vmem %s435_s27, 128 }
  0x57   :  { %p636_p0 = scmp.ne.s32.totalorder %s435_s27, %s635_s29  ;;  %p640_p1 = scmp.lt.s32.totalorder %s435_s27, %s435_s27 }
  0x58   :  { %519 = vmatmul.mubr.msk.f32.vlgmr.msra.gmra.mrb[0].mxu1 %vm126_vm0, %v276_v11  ;;  %p641_p2 = scmp.lt.s32.totalorder %s635_s29, %s635_s29 }
  0x5a   :  { %p642_p3 = por %p641_p2, %p640_p1 }
  0x5c   :  { %p643_p4 = pnand %p642_p3, %p636_p0 }
  0xd9   :  { %v243_v19 = vpop.xlane.xlu0 %242 }
  0xda   :  { %v247_v20 = vmul.f32 4.0, %v243_v19  ;;  %v391_v21 = vpop.xlane.xlu1 %390 }
  0xdb   :  { %v395_v22 = vmul.f32 4.0, %v391_v21 }
  0xdc   :  { %v482_v23 = vadd.f32 -4.0, %v247_v20 }
  0xdd   :  { %v490_v24 = vadd.f32 -4.0, %v395_v22  ;;  %v246_v25 = vpop.xlane.xlu0 %245 }
  0xde   :  { %v251_v26 = vmul.f32 1.442695, %v482_v23  ;;  %v248_v27 = vmul.f32 4.0, %v246_v25  ;;  %v394_v28 = vpop.xlane.xlu1 %393 }
  0xdf   :  { %v399_v29 = vmul.f32 1.442695, %v490_v24  ;;  %v396_v30 = vmul.f32 4.0, %v394_v28 }
  0xe0   :  { %547 = vpow2.f32 %v251_v26  ;;  %v483_v31 = vadd.f32 -4.0, %v248_v27 }
  0xe1   :  { %v491_v32 = vadd.f32 -4.0, %v396_v30  ;;  %549 = vpow2.f32 %v399_v29 }
  0xe2   :  { %v253_v33 = vmul.f32 1.442695, %v483_v31 }
  0xe3   :  { %v401_v34 = vmul.f32 1.442695, %v491_v32 }
  0xe4   :  { %551 = vpow2.f32 %v253_v33 }
  0xe5   :  { %553 = vpow2.f32 %v401_v34 }
  0xea   :  { %v548_v35 = vpop.eup %547 }
  0xeb   :  { %v550_v36 = vpop.eup %549  ;;  %v256_v37 = vsel %vm255_vm2, %v548_v35, 0.0  ;;  %v419_v35 = vlaneseq }
  0xec   :  { %v403_v41 = vsel %vm255_vm2, %v550_v36, 0.0 }
  0xed   :  { %v420_v36 = vshrl.u32 %v419_v35, 7 }
  0xee   :  { %v552_v38 = vpop.eup %551 }
  0xef   :  { %v554_v39 = vpop.eup %553  ;;  %v257_v40 = vsel %vm255_vm2, %v552_v38, 0.0  ;;  %vm422_vm4 = vcmp.eq.s32.totalorder %v420_v36, 1  ;;  %vm421_vm5 = vcmp.eq.s32.totalorder %v420_v36, 0 }
  0xf0   :  { %v258_v42 = vadd.f32 %v257_v40, %v256_v37  ;;  %v404_v43 = vsel %vm255_vm2, %v554_v39, 0.0 }
  0xf1   :  { %v405_v44 = vadd.f32 %v404_v43, %v403_v41 }
  0xf2   :  { %259 = vadd.xlane.f32.xlu1 %v258_v42 }
  0xf6   :  { %406 = vadd.xlane.f32.xlu1 %v405_v44 }
 0x125   :  { %v513_v45 = vpop.f32.mrb[0].mxu0 }
 0x126   :  { %v215_v46 = vmul.f32 4.0, %v513_v45  ;;  %v205_v47 = vpop.f32.mrb[1].mxu0 }
 0x127   :  { %v214_v49 = vmul.f32 4.0, %v205_v47 }
 0x128   :  { %v481_v52 = vadd.f32 -4.0, %v215_v46 }
 0x129   :  { %v480_v54 = vadd.f32 -4.0, %v214_v49 }
 0x12a   :  { %v220_v56 = vmul.f32 1.442695, %v481_v52 }
 0x12b   :  { %v520_v48 = vpop.f32.mrb[0].mxu1  ;;  %v218_v58 = vmul.f32 1.442695, %v480_v54 }
 0x12c   :  { %v367_v50 = vmul.f32 4.0, %v520_v48  ;;  %v357_v51 = vpop.f32.mrb[1].mxu1  ;;  %555 = vpow2.f32 %v220_v56 }
 0x12d   :  { %v366_v53 = vmul.f32 4.0, %v357_v51  ;;  %557 = vpow2.f32 %v218_v58 }
 0x12e   :  { %v489_v55 = vadd.f32 -4.0, %v367_v50 }
 0x12f   :  { %v488_v57 = vadd.f32 -4.0, %v366_v53 }
 0x130   :  { %v372_v59 = vmul.f32 1.442695, %v489_v55 }
 0x131   :  { %v370_v60 = vmul.f32 1.442695, %v488_v57 }
 0x132   :  { %559 = vpow2.f32 %v372_v59 }
 0x133   :  { %561 = vpow2.f32 %v370_v60 }
 0x136   :  { %v556_v61 = vpop.eup %555 }
 0x137   :  { %v558_v62 = vpop.eup %557  ;;  %v224_v63 = vsel %vm222_vm3, %v556_v61, 0.0 }
 0x138   :  { %v223_v1 = vsel %vm222_vm3, %v558_v62, 0.0 }
 0x139   :  { %v225_v3 = vadd.f32 %v224_v63, %v223_v1 }
 0x13b   :  { %226 = vadd.xlane.f32.xlu0 %v225_v3 }
 0x13c   :  { %v560_v0 = vpop.eup %559 }
 0x13d   :  { %v562_v2 = vpop.eup %561  ;;  %v375_v4 = vsel %vm222_vm3, %v560_v0, 0.0 }
 0x13e   :  { %v374_v5 = vsel %vm222_vm3, %v562_v2, 0.0 }
 0x13f   :  { %v376_v6 = vadd.f32 %v375_v4, %v374_v5 }
 0x141   :  { %377 = vadd.xlane.f32.xlu0 %v376_v6 }
 0x17f   :  { %v260_v7 = vpop.xlane.xlu1 %259 }
 0x180   :  { %v261_v8 = vrot.slane %v260_v7, 4 }
 0x182   :  { %v262_v10 = vadd.f32 %v261_v8, %v260_v7 }
 0x183   :  { %v407_v9 = vpop.xlane.xlu1 %406 }
 0x184   :  { %v408_v11 = vrot.slane %v407_v9, 4  ;;  %v263_v12 = vrot.slane %v262_v10, 2 }
 0x186   :  { %v409_v13 = vadd.f32 %v408_v11, %v407_v9  ;;  %v264_v19 = vadd.f32 %v263_v12, %v262_v10 }
 0x188   :  { %v410_v17 = vrot.slane %v409_v13, 2  ;;  %v265_v25 = vrot.slane %v264_v19, 1 }
 0x18a   :  { %v411_v24 = vadd.f32 %v410_v17, %v409_v13  ;;  %v266_v30 = vadd.f32 %v265_v25, %v264_v19 }
 0x18c   :  { %v412_v31 = vrot.slane %v411_v24, 1 }
 0x18e   :  { %v413_v34 = vadd.f32 %v412_v31, %v411_v24 }
 0x1c8   :  { %v227_v14 = vpop.xlane.xlu0 %226 }
 0x1c9   :  { %v228_v15 = vrot.slane %v227_v14, 4 }
 0x1cb   :  { %v229_v16 = vadd.f32 %v228_v15, %v227_v14 }
 0x1cd   :  { %v230_v20 = vrot.slane %v229_v16, 2 }
 0x1ce   :  { %v378_v18 = vpop.xlane.xlu0 %377 }
 0x1cf   :  { %v379_v21 = vrot.slane %v378_v18, 4  ;;  %v231_v23 = vadd.f32 %v230_v20, %v229_v16 }
 0x1d1   :  { %v380_v22 = vadd.f32 %v379_v21, %v378_v18  ;;  %v232_v27 = vrot.slane %v231_v23, 1 }
 0x1d3   :  { %v381_v26 = vrot.slane %v380_v22, 2  ;;  %v233_v29 = vadd.f32 %v232_v27, %v231_v23 }
 0x1d5   :  { %v382_v28 = vadd.f32 %v381_v26, %v380_v22  ;;  %533 = vpush %v233_v29 }
 0x1d6   :  { %535 = vpush %v266_v30 }
 0x1d7   :  { %v383_v32 = vrot.slane %v382_v28, 1 }
 0x1d9   :  { %v384_v33 = vadd.f32 %v383_v32, %v382_v28 }
 0x1db   :  { %537 = vpush %v384_v33 }
 0x1dc   :  { %539 = vpush %v413_v34 }
 0x206   :  { %s534_s4 = spop %533 }
 0x207   :  { %s238_s3 = ssub.f32 %s534_s4, %s237_s12  ;;  %s536_s17 = spop %535 }
 0x208   :  { %s270_s18 = ssub.f32 %s536_s17, %s269_s13 }
 0x20a   :  { %s272_s15 = sadd.f32 %s270_s18, %s238_s3 }
 0x20c   :  { %s538_s16 = spop %537  ;;  %s273_s22 = smul.f32 %s272_s15, %s271_s19 }
 0x20d   :  { %s386_s5 = ssub.f32 %s538_s16, %s237_s12  ;;  %s540_s20 = spop %539 }
 0x20e   :  { %s415_s21 = ssub.f32 %s540_s20, %s269_s13 }
 0x20f   :  { %s274_s1 = ssub.f32 %s238_s3, %s273_s22 }
 0x210   :  { %s416_s23 = sadd.f32 %s415_s21, %s386_s5 }
 0x211   :  { %v425_v39 = vstv %s274_s1 }
 0x212   :  { %s417_s0 = smul.f32 %s416_s23, %s271_s19 }
 0x214   :  { %s418_s24 = ssub.f32 %s386_s5, %s417_s0 }
 0x216   :  { %v423_v37 = vstv %s418_s24 }
 0x217   :  { %v424_v38 = vsel %vm422_vm4, %v423_v37, 0.0 }
 0x218   :  { %v426_v40 = vsel %vm421_vm5, %v425_v39, %v424_v38 }
 0x219   :  { %427 = vst [vmem:[#allocation11] sm:$0xff] %v426_v40 }
 0x21a   :  { %646 = shalt.err (!%p643_p4)
}
 0x21b   :  { %s647_s28 = scalar_lea.hbm %s811_s6, 128 }
 0x21c   :  { %p648_p5 = scmp.ne.s32.totalorder %s811_s6, %s647_s28  ;;  %p651_p6 = scmp.lt.u32.totalorder %s647_s28, %s811_s6 }
 0x21e   :  { %p653_p7 = pnand %p651_p6, %p648_p5 }
 0x220   :  { %656 = shalt.err (!%p653_p7)
}
 0x221   :  { %437 = dma.vmem_to_hbm [thread:$0]  %s435_s27, 128, %s811_s6, [#allocation7]  }
 0x222   :  { %661 = dma.done.wait [#allocation7], 128  }
 0x223   :  { %662 = vsyncadd [#allocation7], 4294967168 }
 0x224   :  { %441 = vsyncpa [#allocation6], 1 }
 0x225   :  { %442 = vsyncpa [#allocation9], 1 }
 0x226   :  { %443 = vsyncpa [#allocation7], 1 }

</bundles_post_ra>
